<compile_context>
chip_gen: v5e
topology: v5e:2x2
jax: 0.10.0
libtpu: 0.0.40
codegen_flags: <defaults>
</compile_context>

<pallas_src>
import jax
import jax.numpy as jnp
from jax.experimental import pallas as pl
from jax.experimental.pallas import tpu as pltpu


def _gate_mul_kernel(x_ref, g_ref, o_ref):
    # x_ref: (tr, tl) activation tile; g_ref: (tr, 1) per-row gate in x.dtype.
    # Broadcast multiply along lanes in the activation's native dtype.
    o_ref[...] = x_ref[...] * g_ref[...]


def _sublane_align(dtype):
    # Packed-dtype sublane minimum: f32 -> 8, bf16 -> 16, int8/fp8 -> 32.
    itemsize = jnp.dtype(dtype).itemsize
    return 8 * max(1, 4 // itemsize)


_BLOCK_BYTES = 2 * 1024 * 1024      # per-block byte budget (>= the ~85% roofline plateau)
_TARGET_LANES = 2048                # nominal lane-tile target (multiple of 128)
_MIN_SPLIT_BYTES = 512 * 1024       # only force >=4 blocks (v7x dual-TC) above this size


def _pick_lane_tile(cols, target):
    """Full extent if it fits, else a balanced multiple of 128 (no tiny masked tail)."""
    if cols <= target:
        return cols
    n_tiles = pl.cdiv(cols, target)
    return pl.cdiv(pl.cdiv(cols, n_tiles), 128) * 128


def _pick_row_tile(rows, tl, itemsize, sub_align):
    """Row tile from the byte budget; the gate block pads (tr,1)->(tr,128) in VMEM."""
    tr_budget = max(sub_align, _BLOCK_BYTES // ((tl + 128) * itemsize))
    if rows <= tr_budget:
        return rows
    return max(sub_align, (tr_budget // sub_align) * sub_align)


def _split_for_cores(tr, tl, rows, cols, sub_align, itemsize, min_blocks=4):
    """Shrink tiles (balanced) so the grid has >= min_blocks blocks for v7x's two
    TensorCores, but only when the problem is big enough to amortize the extra
    per-grid-step overhead."""
    if rows * cols * itemsize < _MIN_SPLIT_BYTES:
        return tr, tl

    def n_blocks(a, b):
        return pl.cdiv(rows, a) * pl.cdiv(cols, b)

    while n_blocks(tr, tl) < min_blocks:
        can_r = tr >= 2 * sub_align
        can_l = tl >= 2 * 128
        if not (can_r or can_l):
            break
        if can_l and (not can_r or (tl // 128) >= (tr // sub_align)):
            new_n = pl.cdiv(cols, tl) * 2
            tl = max(128, pl.cdiv(pl.cdiv(cols, new_n), 128) * 128)
        else:
            new_n = pl.cdiv(rows, tr) * 2
            tr = max(sub_align, pl.cdiv(pl.cdiv(rows, new_n), sub_align) * sub_align)
    return tr, tl


def virtual_gate_forward(x, gate_f, width, dim=1, donate_x=False):
    """Pallas implementation of VirtualGate.forward for dim=1 (channel gating)."""
    # TODO(synk): only the dim=1 path of the torch module is implemented; the
    # dim=-1 path (mask expanded along -2) is not.
    assert dim == 1, "kernel implemented for dim=1 (channel gating)"
    assert x.ndim >= 2
    n = x.shape[0]
    c = x.shape[1]
    bs, gw = gate_f.shape
    assert gw == width, "gate_f second dim must equal width"
    assert c % width == 0, "channels must be divisible by width"
    assert n % bs == 0, "batch must be divisible by gate batch size"

    group = c // width
    spatial = 1
    for d in x.shape[2:]:
        spatial *= d

    # Exploit repeat_interleave: contiguous runs of group*spatial elements share
    # one gate value -> flatten to (N*width, group*spatial), one scalar per row.
    rows = n * width
    cols = group * spatial
    x2 = x.reshape(rows, cols)            # row-major view, no mask materialization

    g = gate_f
    if bs != n:
        g = jnp.tile(g, (n // bs, 1))     # tiny (N, width) array, cheap glue
    # Gate in x.dtype: halves its padded (tr,128) VMEM footprint and keeps the
    # multiply native (bf16 VPU on v6e/v7x).  Matches the reference, which casts
    # the mask to x.dtype before multiplying.
    g2 = g.reshape(rows, 1).astype(x.dtype)

    itemsize = jnp.dtype(x.dtype).itemsize
    sub_align = _sublane_align(x.dtype)

    # Lane tile first (raise the target when there are few rows so the block
    # still reaches the byte budget), then the row tile from the budget, then
    # ensure the grid can be sharded across v7x's two TensorCores.
    lane_target = max(_TARGET_LANES, _BLOCK_BYTES // max(1, rows * itemsize))
    tl = _pick_lane_tile(cols, lane_target)
    tr = _pick_row_tile(rows, tl, itemsize, sub_align)
    tr, tl = _split_for_cores(tr, tl, rows, cols, sub_align, itemsize)

    grid = (pl.cdiv(rows, tr), pl.cdiv(cols, tl))

    extra = {}
    if donate_x:
        # In-place gating into x's HBM buffer.  Only a real win if the caller
        # also donates x at the jit boundary (donate_argnums); otherwise XLA
        # inserts a defensive copy.
        extra["input_output_aliases"] = {0: 0}

    out = pl.pallas_call(
        _gate_mul_kernel,
        out_shape=jax.ShapeDtypeStruct((rows, cols), x.dtype),
        grid_spec=pltpu.PrefetchScalarGridSpec(
            num_scalar_prefetch=0,
            grid=grid,
            in_specs=[
                pl.BlockSpec((tr, tl), lambda i, j: (i, j)),
                # Gate block is independent of the inner lane axis j, so it
                # stays resident instead of being re-fetched per lane tile.
                pl.BlockSpec((tr, 1), lambda i, j: (i, 0)),
            ],
            out_specs=pl.BlockSpec((tr, tl), lambda i, j: (i, j)),
        ),
        compiler_params=pltpu.CompilerParams(
            dimension_semantics=("parallel", "parallel"),
        ),
        **extra,
    )(x2, g2)

    return out.reshape(x.shape)


class VirtualGate:
    """JAX mirror of the PyTorch module (parameters only; forward via Pallas)."""

    def __init__(self, width, bs=1):
        self.width = width
        self.gate_f = jnp.ones((bs, width), dtype=jnp.float32)

    def set_structure_value(self, value):
        self.gate_f = value

    def __call__(self, x, dim=1):
        return virtual_gate_forward(x, self.gate_f, self.width, dim=dim)


def _reference(x, gate_f, width):
    n, c = x.shape[0], x.shape[1]
    bs = gate_f.shape[0]
    mask = jnp.repeat(gate_f, c // width, axis=1)          # (bs, C)
    if bs != n:
        mask = jnp.tile(mask, (n // bs, 1))                # (N, C)
    mask = mask.reshape(mask.shape + (1,) * (x.ndim - 2))
    return mask.astype(x.dtype) * x


if __name__ == "__main__":
    key = jax.random.PRNGKey(0)
    kx, kg, kx2, kg2, kx3, kg3 = jax.random.split(key, 6)

    # --- test 1: small primary case (single block, full extents) ---
    N, C, H, W = 2, 4, 16, 16
    width, bs = 4, 1
    x = jax.random.normal(kx, (N, C, H, W), dtype=jnp.float32)
    gate = VirtualGate(width, bs=bs)
    gate.set_structure_value(jax.random.uniform(kg, (bs, width), dtype=jnp.float32))
    out = jax.block_until_ready(gate(x, dim=1))
    ref = _reference(x, gate.gate_f, width)
    assert out.shape == x.shape and out.dtype == x.dtype
    assert jnp.allclose(out, ref, atol=1e-6, rtol=1e-6)

    # --- test 2: ragged spatial (cols not a multiple of 128, full-extent tile) ---
    N2, C2, H2, W2 = 2, 16, 47, 47
    width2, bs2 = 8, 1
    x2 = jax.random.normal(kx2, (N2, C2, H2, W2), dtype=jnp.float32)
    gate2 = VirtualGate(width2, bs=bs2)
    gate2.set_structure_value(jax.random.uniform(kg2, (bs2, width2), dtype=jnp.float32))
    out2 = jax.block_until_ready(gate2(x2, dim=1))
    ref2 = _reference(x2, gate2.gate_f, width2)
    assert out2.shape == x2.shape and out2.dtype == x2.dtype
    assert jnp.allclose(out2, ref2, atol=1e-6, rtol=1e-6)

    # --- test 3: bf16, bs != N, large enough to exercise tiling + core split ---
    N3, C3, H3, W3 = 8, 128, 28, 28
    width3, bs3 = 32, 2
    x3 = jax.random.normal(kx3, (N3, C3, H3, W3), dtype=jnp.bfloat16)
    gate3 = VirtualGate(width3, bs=bs3)
    gate3.set_structure_value(jax.random.uniform(kg3, (bs3, width3), dtype=jnp.float32))
    out3 = jax.block_until_ready(gate3(x3, dim=1))
    ref3 = _reference(x3, gate3.gate_f, width3)
    assert out3.shape == x3.shape and out3.dtype == x3.dtype
    assert jnp.allclose(out3.astype(jnp.float32), ref3.astype(jnp.float32),
                        atol=2e-2, rtol=2e-2)

    print("KERNEL_OK")
</pallas_src>

<mosaic_0001>
module attributes {stable_mosaic.version = 11 : i64} {
  func.func @_gate_mul_kernel(%arg0: i32, %arg1: i32, %arg2: memref<8x256xf32, #tpu.memory_space<vmem>>, %arg3: memref<8x1xf32, #tpu.memory_space<vmem>>, %arg4: memref<8x256xf32, #tpu.memory_space<vmem>>) attributes {dimension_semantics = [#tpu.dimension_semantics<parallel>, #tpu.dimension_semantics<parallel>], iteration_bounds = array<i64: 1, 1>, scalar_prefetch = 0 : i64, scratch_operands = 0 : i64, tpu.core_type = #tpu.core_type<tc>, window_params = [{transform_indices = @transform_0, window_bounds = array<i64: 8, 256>}, {transform_indices = @transform_1, window_bounds = array<i64: 8, 1>}, {transform_indices = @transform_2, window_bounds = array<i64: 8, 256>}]} {
    %c0 = arith.constant 0 : index
    %c0_0 = arith.constant 0 : index
    %0 = vector.load %arg2[%c0, %c0_0] : memref<8x256xf32, #tpu.memory_space<vmem>>, vector<8x256xf32>
    %c0_1 = arith.constant 0 : index
    %c0_2 = arith.constant 0 : index
    %1 = vector.load %arg3[%c0_1, %c0_2] : memref<8x1xf32, #tpu.memory_space<vmem>>, vector<8x1xf32>
    %2 = vector.broadcast %1 : vector<8x1xf32> to vector<8x256xf32>
    %3 = arith.mulf %0, %2 : vector<8x256xf32>
    %c0_3 = arith.constant 0 : index
    %c0_4 = arith.constant 0 : index
    %4 = vector.load %arg4[%c0_3, %c0_4] : memref<8x256xf32, #tpu.memory_space<vmem>>, vector<8x256xf32>
    tpu.vector_store %arg4[%c0_3, %c0_4], %3 {strides = array<i32>} : memref<8x256xf32, #tpu.memory_space<vmem>>, vector<8x256xf32>,
    return
  }
  func.func @transform_0(%arg0: i32, %arg1: i32) -> (i32, i32) {
    %c0_i32 = arith.constant 0 : i32
    return %arg0, %arg1 : i32, i32
  }
  func.func @transform_1(%arg0: i32, %arg1: i32) -> (i32, i32) {
    %c0_i32 = arith.constant 0 : i32
    %c0_i32_0 = arith.constant 0 : i32
    return %arg0, %c0_i32 : i32, i32
  }
  func.func @transform_2(%arg0: i32, %arg1: i32) -> (i32, i32) {
    %c0_i32 = arith.constant 0 : i32
    return %arg0, %arg1 : i32, i32
  }
}

</mosaic_0001>

<bundles_post_ra>
// kernel: tpu_custom_call.1
= control target key start
LH: loop header
LB: loop body
LE: loop exit
PB: predicated region body
PF: predicated region fallthrough
CT: control target
= control target key end

     0   :  { %7 = vsyncpa [#allocation3], 0  ;;  %s138_s0 = inlined_call_operand.hbm [shape: f32[8,256], index: 0, kind: input, shape index: {}]   ;;  %s139_s1 = inlined_call_operand.vmem [shape: f32[8,1], index: 1, kind: input, shape index: {}]   ;;  %s140_s2 = inlined_call_operand.hbm [shape: f32[8,256], index: 2, kind: output, shape index: {}]  }
   0x1   :  { %8 = vsyncpa [#allocation4], 0  ;;  %s14_s11 = sshll.u32 %s138_s0, 4  ;;  %s111_s12 = smov [#allocation2]   ;;  %s15_s11 = int_to_ptr.hbm [resolvable:$true] %s14_s11 }
   0x2   :  { %s16_s13 = sshll.u32 %s111_s12, 4  ;;  %s17_s13 = int_to_ptr.vmem [resolvable:$true] %s16_s13 }
   0x3   :  { %19 = dma.hbm_to_vmem [thread:$0]  %s15_s11, 256, %s17_s13, [#allocation3]  }
   0x4   :  { %107 = dma.done.wait [#allocation3], 256  }
   0x5   :  { %108 = vsyncadd [#allocation3], 4294967040  ;;  %v112_v0 = vmov 0   ;;  %v28_v1 = vld [vmem:[%s139_s1] sm:$0xff]  ;;  %v27_v3 = vld [vmem:[#allocation2 + $0x8] sm:$0xff]  ;;  %s113_s16 = smov [#allocation5]  }
   0x6   :  { %58 = vset.pattern.permute.xlu0 %v112_v0  ;;  %v26_v2 = vld [vmem:[#allocation2] sm:$0xff]  ;;  %s43_s17 = sshll.u32 %s113_s16, 4  ;;  %s45_s19 = sshll.u32 %s140_s2, 4  ;;  %s44_s17 = int_to_ptr.vmem [resolvable:$true] %s43_s17  ;;  %s46_s19 = int_to_ptr.hbm [resolvable:$true] %s45_s19 }
   0x7   :  { %31 = vperm.xlu0 %58, %v28_v1  }
  0x79   :  { %v32_v4 = vpop.permute.xlu0 %31 }
  0x7a   :  { %v34_v5 = vmul.f32 %v32_v4, %v26_v2  ;;  %v35_v6 = vmul.f32 %v32_v4, %v27_v3 }
  0x7c   :  { %36 = vst [vmem:[#allocation5] sm:$0xff] %v34_v5 }
  0x7d   :  { %37 = vst [vmem:[#allocation5 + $0x8] sm:$0xff] %v35_v6 }
  0x7e   :  { %48 = dma.vmem_to_hbm [thread:$0]  %s44_s17, 256, %s46_s19, [#allocation4]  }
  0x7f   :  { %109 = dma.done.wait [#allocation4], 256  }
  0x80   :  { %110 = vsyncadd [#allocation4], 4294967040 }
  0x81   :  { %53 = vsyncpa [#allocation3], 1 }
  0x82   :  { %54 = vsyncpa [#allocation4], 1 }

</bundles_post_ra>
